<compile_context>
chip_gen: v7x
topology: tpu7x:2x2x1
jax: 0.10.0
libtpu: 0.0.40
codegen_flags: <defaults>
</compile_context>

<pallas_src>
import functools
import math
from dataclasses import dataclass

import numpy as np
import jax
import jax.numpy as jnp
from jax.experimental import pallas as pl
from jax.experimental.pallas import tpu as pltpu


# ----------------------------------------------------------------------------
# Kernel 1: bilinear resize (align_corners=False) + binarize (mask[mask>0]=1)
# out = where(Wh @ X @ Ww^T > 0, 1, .)   -- two bf16 MXU matmuls per plane,
# several (n, c) planes per grid step, grid marked "parallel" (v7x megacore).
# ----------------------------------------------------------------------------
def _resize_binarize_kernel(wh_ref, x_ref, wwt_ref, o_ref, *, planes):
    wh = wh_ref[...]                                   # (out_h, hin)  bf16
    wwt = wwt_ref[...]                                 # (win, out_w)  bf16
    for p in range(planes):                            # small static unroll
        t = jnp.dot(wh, x_ref[p], preferred_element_type=jnp.float32)
        y = jnp.dot(t.astype(jnp.bfloat16), wwt,
                    preferred_element_type=jnp.float32)
        o_ref[p] = jnp.where(y > 0.0, 1.0, y)


def _bilinear_weights(out_size, in_size):
    # PyTorch bilinear, align_corners=False: src = scale*(i+0.5)-0.5, clamped at 0
    scale = in_size / out_size
    i = np.arange(out_size, dtype=np.float64)
    src = np.maximum(scale * (i + 0.5) - 0.5, 0.0)
    i0 = np.minimum(np.floor(src).astype(np.int64), in_size - 1)
    i1 = np.minimum(i0 + 1, in_size - 1)
    l1 = src - i0
    l0 = 1.0 - l1
    W = np.zeros((out_size, in_size), dtype=np.float32)
    np.add.at(W, (np.arange(out_size), i0), l0)
    np.add.at(W, (np.arange(out_size), i1), l1)
    return W


def bilinear_resize_binarize(mask_nchw, out_h, out_w):
    n, c, hin, win = mask_nchw.shape
    P = n * c
    wh = jnp.asarray(_bilinear_weights(out_h, hin), dtype=jnp.bfloat16)   # (out_h, hin)
    wwt = jnp.asarray(_bilinear_weights(out_w, win).T, dtype=jnp.bfloat16)  # (win, out_w)
    x = mask_nchw.reshape(P, hin, win).astype(jnp.bfloat16)
    pps = math.gcd(P, 8)                       # planes per grid step (divisor of P, <= 8)
    out = pl.pallas_call(
        functools.partial(_resize_binarize_kernel, planes=pps),
        grid=(P // pps,),
        in_specs=[
            pl.BlockSpec((out_h, hin), lambda i: (0, 0)),
            pl.BlockSpec((pps, hin, win), lambda i: (i, 0, 0)),
            pl.BlockSpec((win, out_w), lambda i: (0, 0)),
        ],
        out_specs=pl.BlockSpec((pps, out_h, out_w), lambda i: (i, 0, 0)),
        out_shape=jax.ShapeDtypeStruct((P, out_h, out_w), jnp.float32),
        compiler_params=pltpu.CompilerParams(dimension_semantics=("parallel",)),
    )(wh, x, wwt)
    return out.reshape(n, c, out_h, out_w)


# ----------------------------------------------------------------------------
# Kernel 2: per-token reduction on the (b, L, c*4) patch values.
# PyTorch does sum over 16*c*4 identical-copy values; 16 * sum(c*4) is exactly
# the same number, so the comparison against 0.5 is bit-identical.
# ----------------------------------------------------------------------------
def _token_mask_kernel(m_ref, o_ref):
    s = jnp.sum(m_ref[...], axis=-1) * 16.0
    o_ref[...] = (s > 0.5).astype(jnp.int32)


def token_bool_mask(mask_tok4):
    b, L, dd = mask_tok4.shape
    return pl.pallas_call(
        _token_mask_kernel,
        out_shape=jax.ShapeDtypeStruct((b, L), jnp.int32),
    )(mask_tok4.astype(jnp.float32))


# ----------------------------------------------------------------------------
# Kernel 3: attention mask construction, tiled over row blocks.
# Per-token category: 0 = text, 1 = masked image token, 2 = background token.
# attention_mask[i, j] = NOT ((cat_i==1 & cat_j==2) | (cat_i==2 & cat_j==1))
# Output is int8 (caller converts to bool); grid is "parallel" for v7x.
# ----------------------------------------------------------------------------
def _attn_mask_kernel(cat_row_ref, cat_col_ref, mask_ref):
    ci = cat_row_ref[...]                              # (TILE_S, 1) int32
    cj = cat_col_ref[...]                              # (1, S)      int32
    blocked = ((ci == 1) & (cj == 2)) | ((ci == 2) & (cj == 1))
    mask_ref[...] = (~blocked).astype(jnp.int8)


def build_attention_mask(cat, *, row_tile=512):
    S = int(cat.shape[0])
    cat_row = cat.reshape(S, 1).astype(jnp.int32)
    cat_col = cat.reshape(1, S).astype(jnp.int32)
    tile = S if S <= row_tile else row_tile            # row_tile is a multiple of 8
    grid = (pl.cdiv(S, tile),)
    # VMEM per out buffer: tile * S int8 (e.g. 512 x 4608 ~ 2.3 MB) -> safe on v5e too.
    return pl.pallas_call(
        _attn_mask_kernel,
        grid=grid,
        in_specs=[
            pl.BlockSpec((tile, 1), lambda i: (i, 0)),
            pl.BlockSpec((1, S), lambda i: (0, 0)),
        ],
        out_specs=pl.BlockSpec((tile, S), lambda i: (i, 0)),
        out_shape=jax.ShapeDtypeStruct((S, S), jnp.int8),
        compiler_params=pltpu.CompilerParams(dimension_semantics=("parallel",)),
    )(cat_row, cat_col)


# ----------------------------------------------------------------------------
# Kernel 4: attention scale (1, S) bf16: scale at background tokens, else 0.
# ----------------------------------------------------------------------------
def _attn_scale_kernel(cat_col_ref, scale_ref, *, scale):
    cj = cat_col_ref[...]
    scale_ref[...] = jnp.where(cj == 2, scale, 0.0).astype(jnp.bfloat16)


def build_attention_scale(cat, scale):
    S = int(cat.shape[0])
    cat_col = cat.reshape(1, S).astype(jnp.int32)
    return pl.pallas_call(
        functools.partial(_attn_scale_kernel, scale=float(scale)),
        out_shape=jax.ShapeDtypeStruct((1, S), jnp.bfloat16),
    )(cat_col)


# ----------------------------------------------------------------------------
# JAX glue: schedule + unpack (pure scalar math / layout, no hot path)
# ----------------------------------------------------------------------------
def get_schedule(num_steps, image_seq_len, base_shift=0.5, max_shift=1.15, shift=True):
    timesteps = np.linspace(1.0, 0.0, num_steps + 1)
    if shift:
        m = (max_shift - base_shift) / (4096 - 256)
        b = base_shift - m * 256
        mu = m * image_seq_len + b
        with np.errstate(divide="ignore"):
            timesteps = np.exp(mu) / (np.exp(mu) + (1.0 / timesteps - 1.0) ** 1.0)
    return timesteps.tolist()


def unpack(x, height, width):
    # rearrange "b (h w) (c ph pw) -> b c (h ph) (w pw)", ph=pw=2
    b, L, dd = x.shape
    hh = math.ceil(height / 16)
    ww = math.ceil(width / 16)
    c = dd // 4
    x = x.reshape(b, hh, ww, c, 2, 2)
    x = x.transpose(0, 3, 1, 4, 2, 5)
    return x.reshape(b, c, hh * 2, ww * 2)


@dataclass
class Opts:
    height: int
    width: int
    attn_mask: bool = True
    attn_scale: float = 1.0
    denoise_num_steps: int = 4
    skip_step: int = 0
    inversion_guidance: float = 1.5
    denoise_guidance: float = 3.5


class FluxKvEditInf:
    """JAX/Pallas port of Flux_kv_edit_inf (inference-mode forward)."""

    def __init__(self, name="flux-dev"):
        self.name = name
        self.is_dev = name != "flux-schnell"
        # TODO(synk): the PyTorch __init__ loads the full Flux_kv transformer; the model
        # weights / denoise loop are not representable as a standalone Pallas kernel here.

    def forward(self, inp, inp_target, mask, opts):
        info = {"feature": {}}
        bs, L, d = inp["img"].shape
        _, tokens_L, _ = inp["txt"].shape
        h = opts.height // 8
        w = opts.width // 8

        # --- F.interpolate(bilinear) + mask[mask>0]=1  (Pallas kernel 1, bf16 MXU) ---
        mask_hw = bilinear_resize_binarize(mask, h, w)          # (b, c, h, w) in {0,1}

        # --- patchify to (b, L, c*4) once; info["mask"] is 16 identical copies ---
        b_, c_, _, _ = mask_hw.shape
        m4 = mask_hw.reshape(b_, c_, h // 2, 2, w // 2, 2)
        m4 = m4.transpose(0, 2, 4, 1, 3, 5).reshape(
            b_, (h // 2) * (w // 2), c_ * 4)                    # (b, L, c*4), (c ph pw)
        info["mask"] = jnp.tile(m4, (1, 1, 16))                 # (b, L, 16*c*4) == (b, L, d)
        assert info["mask"].shape[1] == L and info["mask"].shape[2] == d

        # --- bool_mask = mask.sum(dim=2) > 0.5  (Pallas kernel 2, 16x less traffic) ---
        bool_mask_i32 = token_bool_mask(m4)                     # (b, L) int32

        # category vector built on device (feeds the attention kernels directly)
        tok_masked = jnp.any(bool_mask_i32 > 0, axis=0)         # (L,) bool
        img_cat = jnp.where(tok_masked, jnp.int32(1), jnp.int32(2))
        cat = jnp.concatenate([jnp.zeros((tokens_L,), jnp.int32), img_cat])

        # host sync only for the genuinely dynamic-shape index list (torch.nonzero)
        bool_mask_host = np.asarray(jax.device_get(bool_mask_i32)) > 0
        mask_indices = np.argwhere(bool_mask_host)[:, 1]
        info["mask_indices"] = mask_indices
        any_background = bool((~bool_mask_host).any())

        seq_len = L + tokens_L
        assert int(cat.shape[0]) == seq_len

        attention_mask = None
        if opts.attn_mask and any_background:
            mask_i8 = build_attention_mask(cat)                 # (S, S) int8, tiled kernel
            attention_mask = mask_i8.astype(jnp.bool_)[None]    # (1, S, S) bool
            print("attention_mask", attention_mask.shape)
        info["attention_mask"] = attention_mask

        attention_scale = None
        if opts.attn_scale != 0 and any_background:
            attention_scale = build_attention_scale(cat, opts.attn_scale)[None]  # (1,1,S) bf16
        info["attention_scale"] = attention_scale

        denoise_timesteps = get_schedule(opts.denoise_num_steps, inp["img"].shape[1],
                                         shift=self.name != "flux-schnell")
        denoise_timesteps = denoise_timesteps[opts.skip_step:]
        info["timesteps"] = denoise_timesteps

        z0 = inp["img"]
        info["inject"] = True
        # TODO(synk): denoise_kv_inf needs the full Flux_kv double/single-stream transformer
        # with KV-cache injection; no clean standalone Pallas equivalent, so z_fe is the
        # (unchanged) masked-token slice of z0 here.
        z_fe = z0[:, mask_indices, :]

        z0 = z0.at[:, mask_indices, :].set(z_fe)
        z0 = unpack(z0.astype(jnp.float32), opts.height, opts.width)
        return z0


if __name__ == "__main__":
    key = jax.random.PRNGKey(0)
    k_img, k_txt, k_vec, k_ttxt, k_tvec = jax.random.split(key, 5)

    height, width = 128, 128          # latent 16x16 -> 64 image tokens of dim 64
    text_len = 16
    hidden = 32
    hh, ww = height // 16, width // 16
    L = hh * ww
    d = 64
    bs = 1

    inp = {
        "img": jax.random.normal(k_img, (bs, L, d), jnp.float32),
        "img_ids": jnp.zeros((bs, L, 3), jnp.float32),
        "txt": jax.random.normal(k_txt, (bs, text_len, hidden), jnp.float32),
        "txt_ids": jnp.zeros((bs, text_len, 3), jnp.float32),
        "vec": jax.random.normal(k_vec, (bs, hidden), jnp.float32),
    }
    inp_target = {
        "txt": jax.random.normal(k_ttxt, (bs, text_len, hidden), jnp.float32),
        "txt_ids": jnp.zeros((bs, text_len, 3), jnp.float32),
        "vec": jax.random.normal(k_tvec, (bs, hidden), jnp.float32),
    }

    # pixel-space mask (NCHW), deterministic rectangle -> partially masked image
    mask_np = np.zeros((bs, 1, 64, 64), dtype=np.float32)
    mask_np[:, :, 16:40, 8:32] = 1.0
    mask = jnp.asarray(mask_np)

    opts = Opts(height=height, width=width, attn_mask=True, attn_scale=1.0,
                denoise_num_steps=4, skip_step=0)

    model = FluxKvEditInf(name="flux-dev")
    z0 = model.forward(inp, inp_target, mask, opts)
    z0 = jax.block_until_ready(z0)
    assert z0.shape == (bs, 16, height // 8, width // 8), z0.shape
    print("KERNEL_OK")
</pallas_src>

<mosaic_0001>
module attributes {stable_mosaic.version = 11 : i64} {
  func.func @_resize_binarize_kernel(%arg0: i32, %arg1: memref<16x64xbf16, #tpu.memory_space<vmem>>, %arg2: memref<1x64x64xbf16, #tpu.memory_space<vmem>>, %arg3: memref<64x16xbf16, #tpu.memory_space<vmem>>, %arg4: memref<1x16x16xf32, #tpu.memory_space<vmem>>) attributes {dimension_semantics = [#tpu.dimension_semantics<parallel>], iteration_bounds = array<i64: 1>, scalar_prefetch = 0 : i64, scratch_operands = 0 : i64, tpu.core_type = #tpu.core_type<tc>, window_params = [{pipeline_mode = #tpu.pipeline_mode<synchronous>, transform_indices = @transform_0, window_bounds = array<i64: 16, 64>}, {transform_indices = @transform_1, window_bounds = array<i64: 1, 64, 64>}, {pipeline_mode = #tpu.pipeline_mode<synchronous>, transform_indices = @transform_2, window_bounds = array<i64: 64, 16>}, {transform_indices = @transform_3, window_bounds = array<i64: 1, 16, 16>}]} {
    %c0 = arith.constant 0 : index
    %c0_0 = arith.constant 0 : index
    %0 = vector.load %arg1[%c0, %c0_0] : memref<16x64xbf16, #tpu.memory_space<vmem>>, vector<16x64xbf16>
    %c0_1 = arith.constant 0 : index
    %c0_2 = arith.constant 0 : index
    %1 = vector.load %arg3[%c0_1, %c0_2] : memref<64x16xbf16, #tpu.memory_space<vmem>>, vector<64x16xbf16>
    %c0_3 = arith.constant 0 : index
    %c0_4 = arith.constant 0 : index
    %c0_5 = arith.constant 0 : index
    %2 = vector.load %arg2[%c0_3, %c0_4, %c0_5] : memref<1x64x64xbf16, #tpu.memory_space<vmem>>, vector<1x64x64xbf16>
    %3 = vector.shape_cast %2 : vector<1x64x64xbf16> to vector<64x64xbf16>
    %cst = arith.constant dense<0.000000e+00> : vector<16x64xf32>
    %4 = tpu.matmul %0, %3, %cst {dimension_numbers = #tpu.dot_dimension_numbers<[1], [0], [0], [1], [0, 0, 1, 1], [], []>} : vector<16x64xbf16>, vector<64x64xbf16>, vector<16x64xf32> -> vector<16x64xf32>
    %5 = arith.truncf %4 : vector<16x64xf32> to vector<16x64xbf16>
    %cst_6 = arith.constant dense<0.000000e+00> : vector<16x16xf32>
    %6 = tpu.matmul %5, %1, %cst_6 {dimension_numbers = #tpu.dot_dimension_numbers<[1], [0], [0], [1], [0, 0, 1, 1], [], []>} : vector<16x64xbf16>, vector<64x16xbf16>, vector<16x16xf32> -> vector<16x16xf32>
    %cst_7 = arith.constant 0.000000e+00 : f32
    %7 = vector.broadcast %cst_7 : f32 to vector<16x16xf32>
    %8 = arith.cmpf ogt, %6, %7 : vector<16x16xf32>
    %cst_8 = arith.constant 1.000000e+00 : f32
    %9 = vector.broadcast %cst_8 : f32 to vector<16x16xf32>
    %10 = arith.select %8, %9, %6 : vector<16x16xi1>, vector<16x16xf32>
    %c0_9 = arith.constant 0 : index
    %c0_10 = arith.constant 0 : index
    %c0_11 = arith.constant 0 : index
    %11 = vector.load %arg4[%c0_9, %c0_10, %c0_11] : memref<1x16x16xf32, #tpu.memory_space<vmem>>, vector<1x16x16xf32>
    %12 = vector.shape_cast %11 : vector<1x16x16xf32> to vector<16x16xf32>
    %13 = vector.shape_cast %10 : vector<16x16xf32> to vector<1x16x16xf32>
    tpu.vector_store %arg4[%c0_9, %c0_10, %c0_11], %13 {strides = array<i32>} : memref<1x16x16xf32, #tpu.memory_space<vmem>>, vector<1x16x16xf32>,
    return
  }
  func.func @transform_0(%arg0: i32) -> (i32, i32) {
    %c0_i32 = arith.constant 0 : i32
    %c0_i32_0 = arith.constant 0 : i32
    %c0_i32_1 = arith.constant 0 : i32
    return %c0_i32, %c0_i32_0 : i32, i32
  }
  func.func @transform_1(%arg0: i32) -> (i32, i32, i32) {
    %c0_i32 = arith.constant 0 : i32
    %c0_i32_0 = arith.constant 0 : i32
    %c0_i32_1 = arith.constant 0 : i32
    return %arg0, %c0_i32, %c0_i32_0 : i32, i32, i32
  }
  func.func @transform_2(%arg0: i32) -> (i32, i32) {
    %c0_i32 = arith.constant 0 : i32
    %c0_i32_0 = arith.constant 0 : i32
    %c0_i32_1 = arith.constant 0 : i32
    return %c0_i32, %c0_i32_0 : i32, i32
  }
  func.func @transform_3(%arg0: i32) -> (i32, i32, i32) {
    %c0_i32 = arith.constant 0 : i32
    %c0_i32_0 = arith.constant 0 : i32
    %c0_i32_1 = arith.constant 0 : i32
    return %arg0, %c0_i32, %c0_i32_0 : i32, i32, i32
  }
}

</mosaic_0001>

<bundles_post_ra>
// kernel: tpu_custom_call.1
= control target key start
LH: loop header
LB: loop body
LE: loop exit
PB: predicated region body
PF: predicated region fallthrough
CT: control target
= control target key end

     0   :  { %v283_v1 = vmov 0.0   ;;  %vm284_vm0 = vmmov 0   ;;  %s347_s0 = inlined_call_operand.vmem [shape: bf16[16,64], index: 0, kind: input, shape index: {}]   ;;  %s348_s1 = inlined_call_operand.vmem [shape: bf16[1,64,64], index: 1, kind: input, shape index: {}]   ;;  %s349_s2 = inlined_call_operand.vmem [shape: bf16[64,16], index: 2, kind: input, shape index: {}]   ;;  %s350_s3 = inlined_call_operand.hbm [shape: f32[1,16,16], index: 3, kind: output, shape index: {}]  }
   0x1   :  { %v250_v0 = vld [vmem:[%s348_s1] sm:$0xff]   ;;  %221 = vmatprep.subr.bf16.mxu0 %v283_v1  ;;  %233 = vmatprep.subr.bf16.mxu1 %v283_v1  ;;  %v251_v2 = vld [vmem:[%s348_s1 + $0x8] sm:$0xff]   ;;  %v252_v4 = vld [vmem:[%s348_s1 + $0x10] sm:$0xff]  }
   0x2   :  { %222 = vmatpush3.bf16.msra.mxu0 %v250_v0  ;;  %229 = vmatprep.mubr.msk.bf16.mxu0 %vm284_vm0, %v283_v1  ;;  %v255_v3 = vld [vmem:[%s349_s2] sm:$0xff]   ;;  %v256_v5 = vld [vmem:[%s349_s2 + $0x8] sm:$0xff]  }
   0x3   :  { %223 = vmatprep.subr.bf16.mxu0 %v283_v1  ;;  %241 = vmatprep.mubr.msk.bf16.mxu1 %vm284_vm0, %v283_v1 }
   0x4   :  { %234 = vmatpush3.bf16.msra.mxu1 %v255_v3 }
   0x5   :  { %235 = vmatprep.subr.bf16.mxu1 %v283_v1 }
   0x6   :  { %224 = vmatpush3.bf16.msra.mxu0 %v251_v2 }
   0x7   :  { %225 = vmatprep.subr.bf16.mxu0 %v283_v1 }
   0x8   :  { %8 = vsyncpa [#allocation3], 0  ;;  %v253_v6 = vld [vmem:[%s348_s1 + $0x18] sm:$0xff]   ;;  %236 = vmatpush3.bf16.msra.mxu1 %v256_v5  ;;  %v257_v7 = vld [vmem:[%s349_s2 + $0x10] sm:$0xff]   ;;  %vm63_vm1 = vcmask 523264   ;;  %s285_s1 = smov [#allocation2]  }
   0x9   :  { %237 = vmatprep.subr.bf16.mxu1 %v283_v1  ;;  %v254_v8 = vld [vmem:[%s347_s0] sm:$0xff]   ;;  %v258_v9 = vld [vmem:[%s349_s2 + $0x18] sm:$0xff]   ;;  %s189_s30 = sshll.u32 %s285_s1, 4  ;;  %vm181_vm2 = vcmask 130048   ;;  %s190_s30 = int_to_ptr.vmem [resolvable:$true] %s189_s30 }
   0xa   :  { %226 = vmatpush3.bf16.msra.mxu0 %v252_v4  ;;  %s259_s0 = scalar_lea.vmem %s190_s30, 256  ;;  %p264_p1 = scmp.lt.s32.totalorder %s190_s30, %s190_s30 }
   0xb   :  { %227 = vmatprep.subr.bf16.mxu0 %v283_v1  ;;  %p260_p0 = scmp.ne.s32.totalorder %s190_s30, %s259_s0  ;;  %p265_p2 = scmp.lt.s32.totalorder %s259_s0, %s259_s0 }
   0xc   :  { %238 = vmatpush3.bf16.msra.mxu1 %v257_v7 }
   0xd   :  { %239 = vmatprep.subr.bf16.mxu1 %v283_v1  ;;  %p266_p3 = por %p265_p2, %p264_p1 }
   0xe   :  { %228 = vmatpush3.bf16.msra.mxu0 %v253_v6 }
   0xf   :  { %p267_p4 = pnand %p266_p3, %p260_p0 }
  0x10   :  { %240 = vmatpush3.bf16.msra.mxu1 %v258_v9 }
  0x11   :  { %230 = vmatmul.mubr.msk.bf16.vlgmr.msra.gmra.mrb[0].mxu0 %vm63_vm1, %v254_v8 }
  0xe4   :  { %v101_v10 = vpop.f32.mrb[0].mxu0 }
  0xe5   :  { %v231_v11 = vpop.f32.mrb[1].mxu0 }
  0xe6   :  { %v104_v12 = vpop.f32.mrb[2].mxu0 }
  0xe7   :  { %v108_v13 = vpack.c.bf16 %v104_v12, %v101_v10  ;;  %v232_v14 = vpop.f32.mrb[3].mxu0 }
  0xe9   :  { %242 = vmatmul.mubr.msk.bf16.vlgmr.msra.gmra.mrb[0].mxu1 %vm63_vm1, %v108_v13 }
 0x1bc   :  { %v170_v15 = vpop.f32.mrb[0].mxu1 }
 0x1bd   :  { %vm177_vm3 = vcmp.gt.f32.partialorder %v170_v15, 0.0  ;;  %v243_v16 = vpop.f32.mrb[1].mxu1 }
 0x1be   :  { %v179_v17 = vsel %vm177_vm3, 1.0, %v170_v15  ;;  %v173_v18 = vpop.f32.mrb[2].mxu1 }
 0x1bf   :  { %182 = vst.msk [vmem:[#allocation2] sm:$0xff] %vm181_vm2, %v179_v17  ;;  %vm178_vm4 = vcmp.gt.f32.partialorder %v173_v18, 0.0  ;;  %v244_v19 = vpop.f32.mrb[3].mxu1 }
 0x1c0   :  { %v180_v20 = vsel %vm178_vm4, 1.0, %v173_v18 }
 0x1c1   :  { %183 = vst.msk [vmem:[#allocation2 + $0x8] sm:$0xff] %vm181_vm2, %v180_v20 }
 0x1c2   :  { %270 = shalt.err (!%p267_p4)
}
 0x1c3   :  { %s271_s5 = scalar_lea.hbm %s350_s3, 256 }
 0x1c4   :  { %p272_p5 = scmp.ne.s32.totalorder %s350_s3, %s271_s5  ;;  %p275_p6 = scmp.lt.u32.totalorder %s271_s5, %s350_s3 }
 0x1c6   :  { %p277_p7 = pnand %p275_p6, %p272_p5 }
 0x1c8   :  { %280 = shalt.err (!%p277_p7)
}
 0x1c9   :  { %s286_s10 = smov 128   ;;  %s287_s11 = smov 8  }
 0x1ca   :  { %195 = dma.vmem_to_hbm [thread:$0]  %s190_s30, 256, %s350_s3, [#allocation3], %s286_s10, %s286_s10, %s287_s11  }
 0x1cb   :  { %281 = dma.done.wait [#allocation3], 256  }
 0x1cc   :  { %282 = vsyncadd [#allocation3], 4294967040 }
 0x1cd   :  { %199 = vsyncpa [#allocation3], 1 }

</bundles_post_ra>
